<compile_context>
chip_gen: v5e
topology: v5e:2x2
jax: 0.10.0
libtpu: 0.0.40
codegen_flags: <defaults>
</compile_context>

<pallas_src>
import jax
import jax.numpy as jnp
from jax.experimental import pallas as pl
from jax.experimental.pallas import tpu as pltpu


def _round_up(x, m):
    return ((x + m - 1) // m) * m


def _fused_embed_pool_head_kernel(ids_ref, mask_ref, emb_ref, w_ref, b_ref,
                                  invt_ref, out_ref):
    """One batch tile: embedding gather -> masked mean pool -> head -> /T.

    ids_ref:  (TM, S)  int32 VMEM   token ids (lane-dense along S)
    mask_ref: (TM, S)  f32   VMEM   attention mask (0/1), lane-dense along S
    emb_ref:  (V, H)   cdt   VMEM   embedding table (resident across grid)
    w_ref:    (H, C)   cdt   VMEM   head weight     (resident across grid)
    b_ref:    (1, C)   f32   VMEM   head bias       (resident across grid)
    invt_ref: (1, 1)   f32   SMEM   1 / temperature
    out_ref:  (TM, C)  f32   VMEM   temperature-scaled logits
    """
    ids = ids_ref[...]
    mask = mask_ref[...]
    tm, s = ids.shape
    vocab = emb_ref.shape[0]

    # Fused embedding gather + masked sum over S:
    #   counts[b, v] = sum_s mask[b, s] * [ids[b, s] == v]
    # (compare + elementwise + sublane reduction -- no dynamic gather needed)
    vocab_iota = jax.lax.broadcasted_iota(jnp.int32, (tm, s, vocab), 2)
    onehot = (ids[:, :, None] == vocab_iota).astype(jnp.float32)
    counts = jnp.sum(onehot * mask[:, :, None], axis=1)             # (TM, V)

    denom = jnp.maximum(jnp.sum(mask, axis=1, keepdims=True), 1.0)  # (TM, 1)
    inv_denom = pl.reciprocal(denom)                                # EUP slot

    # sum_s mask * emb[ids]  ==  counts @ E   (MXU, f32 accumulation)
    pooled_sum = jnp.dot(counts.astype(emb_ref.dtype), emb_ref[...],
                         preferred_element_type=jnp.float32)        # (TM, H)
    logits_sum = jnp.dot(pooled_sum.astype(w_ref.dtype), w_ref[...],
                         preferred_element_type=jnp.float32)        # (TM, C)

    # (sum @ W) * (1/denom) + b ; the per-row scaling touches only TM*C elems.
    logits = logits_sum * inv_denom + b_ref[...]
    out_ref[...] = (logits * invt_ref[0, 0]).astype(out_ref.dtype)


def fused_embed_pool_head(input_ids, attention_mask, emb_table, head_w, head_b,
                          temperature, *, compute_dtype=jnp.bfloat16,
                          tm_cap=512):
    """Fused embedding gather + masked-mean pool + linear head + temp scale.

    input_ids:      (B, S) int     token ids
    attention_mask: (B, S) int/float
    emb_table:      (V, H) float   embedding table
    head_w:         (H, C) float   head weight
    head_b:         (C,)   float   head bias
    temperature:    (1,)   float   scalar temperature
    returns:        (B, C) float32 temperature-scaled logits
    """
    B, S = input_ids.shape
    V, H = emb_table.shape
    Hw, C = head_w.shape
    assert H == Hw

    # Batch tile: multiple of 8, sized so the grid has >= 2 steps (v7x has two
    # TensorCores and the batch axis is "parallel") with minimal row padding.
    tm = min(tm_cap, _round_up(pl.cdiv(B, 2), 8))
    n_steps = max(2, pl.cdiv(B, tm))
    Bp = n_steps * tm

    ids_p = jnp.zeros((Bp, S), jnp.int32).at[:B].set(input_ids.astype(jnp.int32))
    mask_p = jnp.zeros((Bp, S), jnp.float32).at[:B].set(
        attention_mask.astype(jnp.float32))
    emb_c = emb_table.astype(compute_dtype)
    w_c = head_w.astype(compute_dtype)
    b_c = head_b.astype(jnp.float32).reshape(1, C)
    inv_t = (1.0 / temperature.astype(jnp.float32)).reshape(1, 1)

    csz = jnp.dtype(compute_dtype).itemsize
    # VMEM sizing: double-buffered per-step blocks + resident tables (+ slack).
    per_step = tm * S * (4 + 4) + tm * C * 4
    resident = V * H * csz + H * C * csz + C * 4
    vmem_limit = int(min(max(2 * per_step + 2 * resident + (1 << 20), 16 << 20),
                         64 << 20))

    flops = 2 * Bp * S * V + 2 * Bp * V * H + 2 * Bp * H * C + 4 * Bp * C
    bytes_accessed = (8 * Bp * S + csz * (V * H + H * C) + 4 * C
                      + 4 * Bp * C + 4)

    out_p = pl.pallas_call(
        _fused_embed_pool_head_kernel,
        out_shape=jax.ShapeDtypeStruct((Bp, C), jnp.float32),
        grid_spec=pltpu.PrefetchScalarGridSpec(
            num_scalar_prefetch=0,
            grid=(n_steps,),
            in_specs=[
                pl.BlockSpec((tm, S), lambda i: (i, 0)),   # token ids
                pl.BlockSpec((tm, S), lambda i: (i, 0)),   # attention mask
                pl.BlockSpec((V, H), lambda i: (0, 0)),    # emb table (resident)
                pl.BlockSpec((H, C), lambda i: (0, 0)),    # head W (resident)
                pl.BlockSpec((1, C), lambda i: (0, 0)),    # head b (resident)
                pl.BlockSpec(memory_space=pltpu.MemorySpace.SMEM),  # 1/T
            ],
            out_specs=pl.BlockSpec((tm, C), lambda i: (i, 0)),
        ),
        compiler_params=pltpu.CompilerParams(
            dimension_semantics=("parallel",),
            vmem_limit_bytes=vmem_limit),
        cost_estimate=pl.CostEstimate(flops=int(flops), transcendentals=0,
                                      bytes_accessed=int(bytes_accessed)),
    )(ids_p, mask_p, emb_c, w_c, b_c, inv_t)

    return out_p[:B]


class ModelWithTemperature:
    """JAX/Pallas port of the PyTorch ModelWithTemperature wrapper.

    Synthetic wrapped model: token embedding + attention-mask-weighted mean
    pooling + linear classification head producing logits (B, C), then
    temperature scaling (logits / temperature).
    """

    def __init__(self, vocab_size=20, hidden=32, num_classes=12, seed=0):
        key = jax.random.PRNGKey(seed)
        k_emb, k_w, k_b = jax.random.split(key, 3)
        self.embedding = jax.random.normal(
            k_emb, (vocab_size, hidden), dtype=jnp.float32) * 0.02
        self.head_w = jax.random.normal(
            k_w, (hidden, num_classes), dtype=jnp.float32) * 0.02
        self.head_b = jax.random.normal(
            k_b, (num_classes,), dtype=jnp.float32) * 0.02
        # nn.Parameter(torch.ones(1) * 1.5)
        self.temperature = jnp.ones((1,), dtype=jnp.float32) * 1.5

    def forward(self, input_ids, attention_mask):
        # Whole forward (embedding gather + pooling + head + temperature scale)
        # runs in a single Pallas kernel.
        return fused_embed_pool_head(input_ids, attention_mask, self.embedding,
                                     self.head_w, self.head_b, self.temperature)

    # Reference (pure JAX, f32 HIGHEST precision) for sanity-checking the kernel.
    def forward_ref(self, input_ids, attention_mask):
        emb = self.embedding[input_ids]
        mask = attention_mask.astype(jnp.float32)[..., None]
        denom = jnp.maximum(mask.sum(axis=1), 1.0)
        pooled = (emb * mask).sum(axis=1) / denom
        logits = jnp.dot(pooled, self.head_w,
                         precision=jax.lax.Precision.HIGHEST) + self.head_b
        return logits / self.temperature[0]


if __name__ == "__main__":
    B, S, VOCAB, HIDDEN, NUM_CLASSES = 2, 8, 20, 32, 12

    key = jax.random.PRNGKey(0)
    k_ids, k_mask = jax.random.split(key)
    input_ids = jax.random.randint(k_ids, (B, S), 0, VOCAB, dtype=jnp.int32)
    # make some trailing positions padded
    lengths = jnp.array([S, S - 3], dtype=jnp.int32)
    attention_mask = (jnp.arange(S)[None, :] < lengths[:, None]).astype(jnp.int32)

    model = ModelWithTemperature(vocab_size=VOCAB, hidden=HIDDEN,
                                 num_classes=NUM_CLASSES, seed=0)

    out = model.forward(input_ids, attention_mask)
    out = jax.block_until_ready(out)

    ref = model.forward_ref(input_ids, attention_mask)
    assert out.shape == (B, NUM_CLASSES)
    # bf16 tables with f32 accumulation -> tolerance loosened vs the f32
    # Precision.HIGHEST reference (per review guidance).
    assert jnp.allclose(out, ref, atol=1e-3, rtol=2e-2), "mismatch vs reference"

    print("KERNEL_OK")
</pallas_src>

<mosaic_0001>
module attributes {stable_mosaic.version = 11 : i64} {
  func.func @_fused_embed_pool_head_kernel(%arg0: i32, %arg1: memref<8x8xi32, #tpu.memory_space<vmem>>, %arg2: memref<8x8xf32, #tpu.memory_space<vmem>>, %arg3: memref<20x32xbf16, #tpu.memory_space<vmem>>, %arg4: memref<32x12xbf16, #tpu.memory_space<vmem>>, %arg5: memref<1x12xf32, #tpu.memory_space<vmem>>, %arg6: memref<1x1xf32, #tpu.memory_space<smem>>, %arg7: memref<8x12xf32, #tpu.memory_space<vmem>>) attributes {dimension_semantics = [#tpu.dimension_semantics<parallel>], iteration_bounds = array<i64: 2>, scalar_prefetch = 0 : i64, scratch_operands = 0 : i64, tpu.core_type = #tpu.core_type<tc>, window_params = [{transform_indices = @transform_0, window_bounds = array<i64: 8, 8>}, {transform_indices = @transform_1, window_bounds = array<i64: 8, 8>}, {pipeline_mode = #tpu.pipeline_mode<synchronous>, transform_indices = @transform_2, window_bounds = array<i64: 20, 32>}, {pipeline_mode = #tpu.pipeline_mode<synchronous>, transform_indices = @transform_3, window_bounds = array<i64: 32, 12>}, {pipeline_mode = #tpu.pipeline_mode<synchronous>, transform_indices = @transform_4, window_bounds = array<i64: 1, 12>}, {transform_indices = @transform_5, window_bounds = array<i64: 1, 1>}, {transform_indices = @transform_6, window_bounds = array<i64: 8, 12>}]} {
    %c0 = arith.constant 0 : index
    %c0_0 = arith.constant 0 : index
    %0 = vector.load %arg1[%c0, %c0_0] : memref<8x8xi32, #tpu.memory_space<vmem>>, vector<8x8xi32>
    %c0_1 = arith.constant 0 : index
    %c0_2 = arith.constant 0 : index
    %1 = vector.load %arg2[%c0_1, %c0_2] : memref<8x8xf32, #tpu.memory_space<vmem>>, vector<8x8xf32>
    %2 = tpu.iota {dimensions = array<i32: 2>} : vector<8x8x20xi32>
    %3 = vector.shape_cast %0 : vector<8x8xi32> to vector<8x8x1xi32>
    %4 = vector.broadcast %3 : vector<8x8x1xi32> to vector<8x8x20xi32>
    %5 = arith.cmpi eq, %4, %2 : vector<8x8x20xi32>
    %6 = arith.extui %5 : vector<8x8x20xi1> to vector<8x8x20xi32>
    %7 = arith.sitofp %6 : vector<8x8x20xi32> to vector<8x8x20xf32>
    %8 = vector.shape_cast %1 : vector<8x8xf32> to vector<8x8x1xf32>
    %9 = vector.broadcast %8 : vector<8x8x1xf32> to vector<8x8x20xf32>
    %10 = arith.mulf %7, %9 : vector<8x8x20xf32>
    %cst = arith.constant dense<0.000000e+00> : vector<8x20xf32>
    %11 = vector.multi_reduction <add>, %10, %cst [1] : vector<8x8x20xf32> to vector<8x20xf32>
    %cst_3 = arith.constant dense<0.000000e+00> : vector<8xf32>
    %12 = vector.multi_reduction <add>, %1, %cst_3 [1] : vector<8x8xf32> to vector<8xf32>
    %13 = vector.shape_cast %12 : vector<8xf32> to vector<8x1xf32>
    %cst_4 = arith.constant 1.000000e+00 : f32
    %14 = vector.broadcast %cst_4 : f32 to vector<8x1xf32>
    %15 = arith.maximumf %13, %14 : vector<8x1xf32>
    %16 = tpu.reciprocal %15 : vector<8x1xf32> -> vector<8x1xf32>
    %17 = arith.truncf %11 : vector<8x20xf32> to vector<8x20xbf16>
    %c0_5 = arith.constant 0 : index
    %c0_6 = arith.constant 0 : index
    %18 = vector.load %arg3[%c0_5, %c0_6] : memref<20x32xbf16, #tpu.memory_space<vmem>>, vector<20x32xbf16>
    %cst_7 = arith.constant dense<0.000000e+00> : vector<8x32xf32>
    %19 = tpu.matmul %17, %18, %cst_7 {dimension_numbers = #tpu.dot_dimension_numbers<[1], [0], [0], [1], [0, 0, 1, 1], [], []>} : vector<8x20xbf16>, vector<20x32xbf16>, vector<8x32xf32> -> vector<8x32xf32>
    %20 = arith.truncf %19 : vector<8x32xf32> to vector<8x32xbf16>
    %c0_8 = arith.constant 0 : index
    %c0_9 = arith.constant 0 : index
    %21 = vector.load %arg4[%c0_8, %c0_9] : memref<32x12xbf16, #tpu.memory_space<vmem>>, vector<32x12xbf16>
    %cst_10 = arith.constant dense<0.000000e+00> : vector<8x12xf32>
    %22 = tpu.matmul %20, %21, %cst_10 {dimension_numbers = #tpu.dot_dimension_numbers<[1], [0], [0], [1], [0, 0, 1, 1], [], []>} : vector<8x32xbf16>, vector<32x12xbf16>, vector<8x12xf32> -> vector<8x12xf32>
    %23 = vector.broadcast %16 : vector<8x1xf32> to vector<8x12xf32>
    %24 = arith.mulf %22, %23 : vector<8x12xf32>
    %c0_11 = arith.constant 0 : index
    %c0_12 = arith.constant 0 : index
    %25 = vector.load %arg5[%c0_11, %c0_12] : memref<1x12xf32, #tpu.memory_space<vmem>>, vector<1x12xf32>
    %26 = vector.broadcast %25 : vector<1x12xf32> to vector<8x12xf32>
    %27 = arith.addf %24, %26 : vector<8x12xf32>
    %c0_13 = arith.constant 0 : index
    %c0_14 = arith.constant 0 : index
    %28 = memref.load %arg6[%c0_13, %c0_14] : memref<1x1xf32, #tpu.memory_space<smem>>
    %29 = vector.broadcast %28 : f32 to vector<8x12xf32>
    %30 = arith.mulf %27, %29 : vector<8x12xf32>
    %c0_15 = arith.constant 0 : index
    %c0_16 = arith.constant 0 : index
    %31 = vector.load %arg7[%c0_15, %c0_16] : memref<8x12xf32, #tpu.memory_space<vmem>>, vector<8x12xf32>
    tpu.vector_store %arg7[%c0_15, %c0_16], %30 {strides = array<i32>} : memref<8x12xf32, #tpu.memory_space<vmem>>, vector<8x12xf32>,
    return
  }
  func.func @transform_0(%arg0: i32) -> (i32, i32) {
    %c0_i32 = arith.constant 0 : i32
    %c0_i32_0 = arith.constant 0 : i32
    return %arg0, %c0_i32 : i32, i32
  }
  func.func @transform_1(%arg0: i32) -> (i32, i32) {
    %c0_i32 = arith.constant 0 : i32
    %c0_i32_0 = arith.constant 0 : i32
    return %arg0, %c0_i32 : i32, i32
  }
  func.func @transform_2(%arg0: i32) -> (i32, i32) {
    %c0_i32 = arith.constant 0 : i32
    %c0_i32_0 = arith.constant 0 : i32
    %c0_i32_1 = arith.constant 0 : i32
    return %c0_i32, %c0_i32_0 : i32, i32
  }
  func.func @transform_3(%arg0: i32) -> (i32, i32) {
    %c0_i32 = arith.constant 0 : i32
    %c0_i32_0 = arith.constant 0 : i32
    %c0_i32_1 = arith.constant 0 : i32
    return %c0_i32, %c0_i32_0 : i32, i32
  }
  func.func @transform_4(%arg0: i32) -> (i32, i32) {
    %c0_i32 = arith.constant 0 : i32
    %c0_i32_0 = arith.constant 0 : i32
    %c0_i32_1 = arith.constant 0 : i32
    return %c0_i32, %c0_i32_0 : i32, i32
  }
  func.func @transform_5(%arg0: i32) -> (i32, i32) {
    %c0_i32 = arith.constant 0 : i32
    %c0_i32_0 = arith.constant 0 : i32
    %c0_i32_1 = arith.constant 0 : i32
    return %c0_i32, %c0_i32_0 : i32, i32
  }
  func.func @transform_6(%arg0: i32) -> (i32, i32) {
    %c0_i32 = arith.constant 0 : i32
    %c0_i32_0 = arith.constant 0 : i32
    return %arg0, %c0_i32 : i32, i32
  }
}

</mosaic_0001>

<bundles_post_ra>
// kernel: tpu_custom_call.1
= control target key start
LH: loop header
LB: loop body
LE: loop exit
PB: predicated region body
PF: predicated region fallthrough
CT: control target
= control target key end

     0   :  { %s1019_s0 = inlined_call_operand.vmem [shape: s32[16,8], index: 0, kind: input, shape index: {}]   ;;  %s1020_s1 = inlined_call_operand.vmem [shape: f32[16,8], index: 1, kind: input, shape index: {}]   ;;  %s1021_s2 = inlined_call_operand.vmem [shape: bf16[20,32], index: 2, kind: input, shape index: {}]   ;;  %s1022_s3 = inlined_call_operand.vmem [shape: bf16[32,12], index: 3, kind: input, shape index: {}]   ;;  %s1023_s4 = inlined_call_operand.vmem [shape: f32[1,12], index: 4, kind: input, shape index: {}]   ;;  %s1024_s5 = inlined_call_operand.<no memory space> [shape: f32[1,1], index: 5, kind: input, shape index: {}]   ;;  %s1025_s6 = inlined_call_operand.hbm [shape: f32[16,12], index: 6, kind: output, shape index: {}]  }
   0x1   :  { %11 = sst [smem:[#allocation2]] %s1024_s5 }
   0x2   :  { %12 = vsyncpa [#allocation4], 0 }
   0x3   :  { %14 = vsyncpa [#allocation4 + $0x1], 0  ;;  %s878_s23 = smov 0   ;;  %s880_s24 = smov 0  }
   0x4   :  { %s882_s25 = smov 0   ;;  %s884_s26 = smov 0  }
   0x5 LB: > { %s899_s5 = sadd.s32 4294967295, %s837_s26   ;;  %s693_s27 = sadd.s32 4294967294, %s837_s26   ;;  %s837_s26 = sphi %s884_s26, %s1031_s26   ;;  %s833_s25 = sphi %s882_s25, %s1030_s25   ;;  %s829_s24 = sphi %s880_s24, %s1029_s24   ;;  %s825_s23 = sphi %s878_s23, %s1028_s23  }
   0x6   : > { %s903_s28 = sadd.s32 1, %s837_s26   ;;  %s163_s29 = sadd.s32 1, %s833_s25 }
   0x7   : > { %s160_s30 = ssub.s32 %s837_s26, %s903_s28  ;;  %p173_p0 = scmp.ne.s32.totalorder %s833_s25, %s829_s24 }
   0x8   : > { %p161_p1 = scmp.eq.s32.totalorder %s160_s30, 0  ;;  %p174_p2 = scmp.eq.s32.totalorder %s899_s5, 1 }
   0x9   : > { %p179_p3 = scmp.ne.s32.totalorder %s829_s24, %s825_s23  ;;  %p180_p4 = scmp.eq.s32.totalorder %s693_s27, 1 }
   0xa   : > { %s914_s7 = scalar_select %p161_p1, %s833_s25, %s163_s29  }
   0xb   : > { %p916_p5 = por %p174_p2, %p173_p0  ;;  %p920_p6 = por %p180_p4, %p179_p3 }
   0xc   : > { %p696_p7 = scmp.ge.s32.totalorder %s837_s26, 1  ;;  %p224_p8 = scmp.lt.s32.totalorder %s837_s26, 3 }
   0xe   : > { %p225_p9 = pnand %p696_p7, %p224_p8 }
   0xf   : > { %p257_p10 = scmp.lt.s32.totalorder (!%p225_p9), %s899_s5, 1  ;;  %s723_s13 = sshll.u32 (!%p225_p9), %s899_s5, 3 }
  0x10   : > { %228 = sbr.rel (%p225_p9) target bundleno = 475 (0x1db), region = 44  ;;  %s617_s18 = scalar_lea.hbm (!%p225_p9), %s1025_s6, %s723_s13 }
  0x11   : > { %s621_s21 = sshll.u32 (!%p225_p9), %s617_s18, 4  ;;  %s622_s21 = int_to_ptr.hbm [resolvable:$true] %s621_s21 }
  0x12   : > { %s789_s22 = sshra.s32 (!%p225_p9), %s622_s21, 4  ;;  %s790_s22 = int_to_ptr.hbm [resolvable:$true] %s789_s22 }
  0x13   : > { %s791_s27 = scalar_lea.hbm (!%p225_p9), %s790_s22, 8  ;;  %p796_p0 = scmp.lt.s32.totalorder (!%p225_p9), %s790_s22, %s1025_s6 }
  0x14   : > { %p792_p11 = scmp.ne.s32.totalorder (!%p225_p9), %s790_s22, %s791_s27 }
  0x15   : > { %v268_v0 = vlaneseq  ;;  %s258_s10 = scalar_select %p257_p10, %s899_s5, 1  ;;  %v839_v28 = vmov 0.0   ;;  %vm414_vm3 = vcmask 162816   ;;  %v500_v43 = vld [vmem:[%s1021_s2 + $0x8] sm:$0x3]  ;;  %vm544_vm6 = vcmask 1041408  }
  0x16   : > { %v537_v46 = vunpack.c.l.b16 %v500_v43  ;;  %v726_v63 = vld [vmem:[%s1021_s2] sm:$0xff]  ;;  %vm471_vm9 = vcmask 64512   ;;  %vm517_vm11 = vcmask 1041409   ;;  %vm519_vm12 = vcmask 1042434   ;;  %p793_p12 = pnand %p792_p11, %p916_p5 }
  0x17   : > { %v272_v1 = vshrl.u32 %v268_v0, 7  ;;  %s698_s11 = sshll.u32 %s258_s10, 3  ;;  %v944_v24 = vand.u32 127, %v268_v0  ;;  %vm521_vm13 = vcmask 1043459   ;;  %vm523_vm14 = vcmask 1044484   ;;  %s254_s10 = sand.u32 1, %s829_s24  }
  0x18   : > { %s264_s14 = scalar_lea.vmem %s1020_s1, %s698_s11  ;;  %s260_s17 = scalar_lea.vmem %s1019_s0, %s698_s11  ;;  %v539_v48 = vpack.c.b16 %v537_v46, %v537_v46  ;;  %vm525_vm15 = vcmask 1045509  }
  0x19   : > { %771 = vset.pattern.permute.xlu2 %v272_v1  ;;  %770 = vset.pattern.permute.xlu1 %v272_v1  ;;  %v934_v2 = vld [vmem:[%s264_s14] sm:$0xff]  ;;  %s601_s11 = sld [smem:[#allocation2]]  ;;  %s697_s12 = sshll.u32 %s254_s10, 3 }
  0x1a   : > { %769 = vset.pattern.permute.xlu0 %v272_v1  ;;  %v266_v3 = vld [vmem:[%s260_s17] sm:$0xff]  ;;  %v350_v4 = vperm.slane %v934_v2, 0  ;;  %v357_v7 = vperm.slane %v934_v2, 1  ;;  %v364_v11 = vperm.slane %v934_v2, 2  ;;  %v378_v13 = vperm.slane %v934_v2, 4  ;;  %s256_s19 = scalar_lea.vmem [#allocation3], %s697_s12  ;;  %p794_p13 = pneg %p793_p12 }
  0x1b   : > { %v284_v5 = vperm.slane %v266_v3, 2  ;;  %v270_v6 = vperm.slane %v266_v3, 0  ;;  %v291_v8 = vperm.slane %v266_v3, 3  ;;  %v277_v9 = vperm.slane %v266_v3, 1  ;;  %s619_s20 = sshll.u32 %s256_s19, 4  ;;  %s607_s5 = scalar_lea.sflag [#allocation4], %s254_s10  ;;  %s620_s20 = int_to_ptr.vmem [resolvable:$true] %s619_s20 }
  0x1c   : > { %v305_v10 = vperm.slane %v266_v3, 5  ;;  %v298_v12 = vperm.slane %v266_v3, 4  ;;  %v312_v14 = vperm.slane %v266_v3, 6  ;;  %v371_v15 = vperm.slane %v934_v2, 3 }
  0x1d   : > { %v392_v16 = vperm.slane %v934_v2, 6  ;;  %v385_v17 = vperm.slane %v934_v2, 5  ;;  %v319_v18 = vperm.slane %v266_v3, 7  ;;  %v399_v19 = vperm.slane %v934_v2, 7 }
  0x1e   : > { %v546_v53 = vsel %vm544_vm6, %v539_v48, 0 }
  0x1f   : > { %554 = vmatpush.bf16.msra.mxu0 %v546_v53 }
  0x21   : > { %355 = vperm.xlu2 %771, %v350_v4   ;;  %289 = vperm.xlu1 %770, %v284_v5  }
  0x22   : > { %275 = vperm.xlu0 %769, %v270_v6  }
  0x23   : > { %555 = vmatpush.bf16.msra.mxu0 %v726_v63 }
  0x29   : > { %362 = vperm.xlu2 %771, %v357_v7   ;;  %296 = vperm.xlu1 %770, %v291_v8  }
  0x2a   : > { %282 = vperm.xlu0 %769, %v277_v9  }
  0x31   : > { %310 = vperm.xlu2 %771, %v305_v10   ;;  %369 = vperm.xlu1 %770, %v364_v11  }
  0x32   : > { %303 = vperm.xlu0 %769, %v298_v12  }
  0x39   : > { %383 = vperm.xlu2 %771, %v378_v13   ;;  %317 = vperm.xlu1 %770, %v312_v14   ;;  %v728_v13 = vld [vmem:[%s1022_s3 + $0x8] sm:$0xff] }
  0x3a   : > { %376 = vperm.xlu0 %769, %v371_v15   ;;  %588 = vmatpush.bf16.msra.mxu1 %v728_v13 }
  0x41   : > { %397 = vperm.xlu2 %771, %v392_v16   ;;  %390 = vperm.xlu1 %770, %v385_v17  }
  0x42   : > { %324 = vperm.xlu0 %769, %v319_v18   ;;  %v472_v18 = vsel %vm471_vm9, %v934_v2, 0.0 }
  0x4a   : > { %404 = vperm.xlu0 %769, %v399_v19  }
  0x6b   : > { %473 = vadd.xlane.f32.xlu1 %v472_v18 }
  0x7b   : > { %v356_v20 = vpop.permute.xlu2 %355 }
  0x83   : > { %v363_v21 = vpop.permute.xlu2 %362 }
  0x8b   : > { %v311_v25 = vpop.permute.xlu2 %310 }
  0x8c   : > { %vm331_vm8 = vcmp.eq.s32.totalorder %v311_v25, %v944_v24 }
  0x8d   : > { %v705_v11 = vsel %vm331_vm8, 1.0, %v839_v28 }
  0x93   : > { %v290_v22 = vpop.permute.xlu1 %289  ;;  %v384_v33 = vpop.permute.xlu2 %383 }
  0x94   : > { %v276_v23 = vpop.permute.xlu0 %275  ;;  %vm328_vm2 = vcmp.eq.s32.totalorder %v290_v22, %v944_v24 }
  0x95   : > { %vm326_vm0 = vcmp.eq.s32.totalorder %v276_v23, %v944_v24  ;;  %v702_v35 = vsel %vm328_vm2, 1.0, %v839_v28  ;;  %vm578_vm2 = vcmask 261120  }
  0x96   : > { %v700_v29 = vsel %vm326_vm0, 1.0, %v839_v28  ;;  %vm527_vm0 = vcmask 1046534  }
  0x97   : > { %v406_v32 = vmul.f32 %v700_v29, %v356_v20 }
  0x99   : > { %v415_v39 = vsel %vm414_vm3, %v406_v32, 0.0 }
  0x9a   : > { %v416_v47 = vrot.slane %v415_v39, 4 }
  0x9b   : > { %v297_v26 = vpop.permute.xlu1 %296  ;;  %v398_v57 = vpop.permute.xlu2 %397 }
  0x9c   : > { %v283_v27 = vpop.permute.xlu0 %282  ;;  %vm329_vm5 = vcmp.eq.s32.totalorder %v297_v26, %v944_v24  ;;  %v417_v54 = vadd.f32 %v416_v47, %v415_v39 }
  0x9d   : > { %vm327_vm1 = vcmp.eq.s32.totalorder %v283_v27, %v944_v24  ;;  %v703_v55 = vsel %vm329_vm5, 1.0, %v839_v28 }
  0x9e   : > { %v701_v30 = vsel %vm327_vm1, 1.0, %v839_v28  ;;  %v418_v3 = vrot.slane %v417_v54, 2  ;;  %vm529_vm1 = vcmask 1047559  }
  0x9f   : > { %v407_v31 = vmul.f32 %v701_v30, %v363_v21 }
  0xa0   : > { %v419_v14 = vadd.f32 %v418_v3, %v417_v54 }
  0xa1   : > { %v422_v34 = vsel %vm414_vm3, %v407_v31, 0.0 }
  0xa2   : > { %v423_v40 = vrot.slane %v422_v34, 4  ;;  %v420_v27 = vrot.slane %v419_v14, 1 }
  0xa3   : > { %v370_v36 = vpop.permute.xlu1 %369 }
  0xa4   : > { %v408_v37 = vmul.f32 %v702_v35, %v370_v36  ;;  %v304_v38 = vpop.permute.xlu0 %303  ;;  %v424_v49 = vadd.f32 %v423_v40, %v422_v34  ;;  %v421_v35 = vadd.f32 %v420_v27, %v419_v14  ;;  %v727_v14 = vld [vmem:[%s1022_s3] sm:$0xff] }
  0xa5   : > { %vm330_vm4 = vcmp.eq.s32.totalorder %v304_v38, %v944_v24  ;;  %589 = vmatpush.bf16.msra.mxu1 %v727_v14 }
  0xa6   : > { %v429_v41 = vsel %vm414_vm3, %v408_v37, 0.0  ;;  %v704_v42 = vsel %vm330_vm4, 1.0, %v839_v28  ;;  %v425_v61 = vrot.slane %v424_v49, 2  ;;  %v490_v47 = vpack.c.bf16 %v421_v35, %v421_v35 }
  0xa7   : > { %v430_v44 = vrot.slane %v429_v41, 4  ;;  %v410_v45 = vmul.f32 %v704_v42, %v384_v33 }
  0xa8   : > { %v426_v8 = vadd.f32 %v425_v61, %v424_v49  ;;  %v509_v54 = vunpack.c.l.b16 %v490_v47 }
  0xa9   : > { %v443_v50 = vsel %vm414_vm3, %v410_v45, 0.0  ;;  %v431_v51 = vadd.f32 %v430_v44, %v429_v41 }
  0xaa   : > { %v444_v58 = vrot.slane %v443_v50, 4  ;;  %v427_v21 = vrot.slane %v426_v8, 1 }
  0xab   : > { %v318_v52 = vpop.permute.xlu1 %317  ;;  %v432_v0 = vrot.slane %v431_v51, 2 }
  0xac   : > { %vm332_vm7 = vcmp.eq.s32.totalorder %v318_v52, %v944_v24  ;;  %v377_v56 = vpop.permute.xlu0 %376  ;;  %v445_v6 = vadd.f32 %v444_v58, %v443_v50  ;;  %v428_v33 = vadd.f32 %v427_v21, %v426_v8 }
  0xad   : > { %v706_v59 = vsel %vm332_vm7, 1.0, %v839_v28  ;;  %v409_v60 = vmul.f32 %v703_v55, %v377_v56  ;;  %v433_v10 = vadd.f32 %v432_v0, %v431_v51  ;;  %vm604_vm7 = vcmask 97280  }
  0xae   : > { %v412_v62 = vmul.f32 %v706_v59, %v398_v57  ;;  %v446_v19 = vrot.slane %v445_v6, 2  ;;  %v491_v43 = vpack.c.bf16 %v428_v33, %v428_v33 }
  0xaf   : > { %v436_v1 = vsel %vm414_vm3, %v409_v60, 0.0  ;;  %v434_v25 = vrot.slane %v433_v10, 1 }
  0xb0   : > { %v457_v4 = vsel %vm414_vm3, %v412_v62, 0.0  ;;  %v437_v5 = vrot.slane %v436_v1, 4  ;;  %v447_v30 = vadd.f32 %v446_v19, %v445_v6  ;;  %v510_v52 = vunpack.c.l.b16 %v491_v43 }
  0xb1   : > { %v458_v7 = vrot.slane %v457_v4, 4  ;;  %v435_v34 = vadd.f32 %v434_v25, %v433_v10 }
  0xb2   : > { %v438_v9 = vadd.f32 %v437_v5, %v436_v1  ;;  %v448_v39 = vrot.slane %v447_v30, 1  ;;  %v518_v60 = vsel %vm517_vm11, %v510_v52, %v509_v54 }
  0xb3   : > { %v391_v12 = vpop.permute.xlu1 %390  ;;  %v459_v20 = vadd.f32 %v458_v7, %v457_v4  ;;  %v492_v44 = vpack.c.bf16 %v435_v34, %v435_v34 }
  0xb4   : > { %v439_v15 = vrot.slane %v438_v9, 2  ;;  %v411_v16 = vmul.f32 %v705_v11, %v391_v12  ;;  %v325_v17 = vpop.permute.xlu0 %324  ;;  %v449_v49 = vadd.f32 %v448_v39, %v447_v30 }
  0xb5   : > { %v460_v31 = vrot.slane %v459_v20, 2  ;;  %vm333_vm10 = vcmp.eq.s32.totalorder %v325_v17, %v944_v24 }
  0xb6   : > { %v440_v22 = vadd.f32 %v439_v15, %v438_v9  ;;  %v450_v23 = vsel %vm414_vm3, %v411_v16, 0.0  ;;  %v707_v37 = vsel %vm333_vm10, 1.0, %v839_v28  ;;  %v511_v28 = vunpack.c.l.b16 %v492_v44 }
  0xb7   : > { %v451_v26 = vrot.slane %v450_v23, 4  ;;  %v461_v40 = vadd.f32 %v460_v31, %v459_v20  ;;  %v494_v58 = vpack.c.bf16 %v449_v49, %v449_v49  ;;  %v772_v31 = vld [vmem:[%s1023_s4] ss:$0 sm:$0xff] }
  0xb8   : > { %v441_v29 = vrot.slane %v440_v22, 1  ;;  %v520_v62 = vsel %vm519_vm12, %v511_v28, %v518_v60 }
  0xb9   : > { %v452_v32 = vadd.f32 %v451_v26, %v450_v23  ;;  %v462_v50 = vrot.slane %v461_v40, 1  ;;  %v513_v3 = vunpack.c.l.b16 %v494_v58 }
  0xba   : > { %v442_v36 = vadd.f32 %v441_v29, %v440_v22 }
  0xbb   : > { %v453_v2 = vrot.slane %v452_v32, 2  ;;  %v463_v59 = vadd.f32 %v462_v50, %v461_v40 }
  0xbc   : > { %v405_v38 = vpop.permute.xlu0 %404  ;;  %v493_v48 = vpack.c.bf16 %v442_v36, %v442_v36 }
  0xbd   : > { %v454_v41 = vadd.f32 %v453_v2, %v452_v32  ;;  %v413_v42 = vmul.f32 %v707_v37, %v405_v38  ;;  %v496_v4 = vpack.c.bf16 %v463_v59, %v463_v59  ;;  %v602_v2 = vstv %s601_s11  ;;  %s795_s11 = scalar_lea.hbm %s1025_s6, 16 }
  0xbe   : > { %v512_v55 = vunpack.c.l.b16 %v493_v48  ;;  %p797_p1 = scmp.lt.s32.totalorder %s795_s11, %s791_s27 }
  0xbf   : > { %v455_v45 = vrot.slane %v454_v41, 1  ;;  %v464_v46 = vsel %vm414_vm3, %v413_v42, 0.0  ;;  %v515_v9 = vunpack.c.l.b16 %v496_v4 }
  0xc0   : > { %v465_v24 = vrot.slane %v464_v46, 4  ;;  %v522_v63 = vsel %vm521_vm13, %v512_v55, %v520_v62  ;;  %p798_p2 = por %p797_p1, %p796_p0 }
  0xc1   : > { %v456_v51 = vadd.f32 %v455_v45, %v454_v41  ;;  %v524_v6 = vsel %vm523_vm14, %v513_v3, %v522_v63 }
  0xc2   : > { %v466_v53 = vadd.f32 %v465_v24, %v464_v46  ;;  %p799_p3 = pnand %p798_p2, %p794_p13 }
  0xc3   : > { %v495_v56 = vpack.c.bf16 %v456_v51, %v456_v51 }
  0xc4   : > { %v467_v57 = vrot.slane %v466_v53, 2 }
  0xc5   : > { %v514_v0 = vunpack.c.l.b16 %v495_v56 }
  0xc6   : > { %v468_v61 = vadd.f32 %v467_v57, %v466_v53 }
  0xc7   : > { %v526_v8 = vsel %vm525_vm15, %v514_v0, %v524_v6 }
  0xc8   : > { %v469_v1 = vrot.slane %v468_v61, 1  ;;  %v528_v11 = vsel %vm527_vm0, %v515_v9, %v526_v8 }
  0xca   : > { %v470_v5 = vadd.f32 %v469_v1, %v468_v61 }
  0xcc   : > { %v497_v7 = vpack.c.bf16 %v470_v5, %v470_v5 }
  0xce   : > { %v516_v10 = vunpack.c.l.b16 %v497_v7 }
  0xd0   : > { %v530_v12 = vsel %vm529_vm1, %v516_v10, %v528_v11 }
  0xd1   : > { %v531_v13 = vpack.c.b16 %v530_v12, %v530_v12 }
  0xd3   : > { %712 = vmatmul.msk.bf16.vlgmr.msra.gmra.mxu0 %vm414_vm3, %v531_v13 }
  0xde   : > { %v474_v18 = vpop.xlane.xlu1 %473 }
  0xdf   : > { %v475_v19 = vmax.f32 %v474_v18, 1.0 }
  0xe1   : > { %773 = vrcp.f32 %v475_v19  ;;  %vm481_vm3 = vweird.f32 %v475_v19  ;;  %v487_v25 = vand.u32 2147483648, %v475_v19  ;;  %v485_v27 = vand.u32 2147483647, %v475_v19 }
  0xe3   : > { %v488_v29 = vor.u32 1.1754944e-38, %v487_v25  ;;  %vm486_vm6 = vcmp.eq.f32.partialorder %v485_v27, 8.507059e+37 }
  0xe7   : > { %v774_v20 = vpop.eup %773 }
  0xe8   : > { %v477_v21 = vmul.f32 %v774_v20, %v475_v19  ;;  %vm482_vm4 = vweird.f32 %v774_v20 }
  0xe9   : > { %vm483_vm5 = vmor %vm481_vm3, %vm482_vm4 }
  0xea   : > { %v478_v22 = vsub.f32 1.0, %v477_v21 }
  0xec   : > { %v479_v23 = vmul.f32 %v774_v20, %v478_v22 }
  0xee   : > { %v480_v26 = vadd.f32 %v774_v20, %v479_v23 }
  0xf0   : > { %v484_v30 = vsel %vm483_vm5, %v774_v20, %v480_v26 }
  0xf1   : > { %v489_v32 = vsel %vm486_vm6, %v488_v29, %v484_v30 }
 0x150   : > { %v557_v15 = vpop.f32.mrf.mxu0 }
 0x151   : > { %v561_v16 = vpack.c.bf16 %v557_v15, %v557_v15 }
 0x153   : > { %721 = vmatmul.msk.bf16.vlgmr.msra.gmra.mxu1 %vm578_vm2, %v561_v16 }
 0x158   : > { %v559_v17 = vpop.f32.mrf.mxu0 }
 0x1d0   : > { %v591_v33 = vpop.f32.mrf.mxu1 }
 0x1d1   : > { %v595_v34 = vmul.f32 %v591_v33, %v489_v32 }
 0x1d3   : > { %v600_v35 = vadd.f32 %v772_v31, %v595_v34 }
 0x1d5   : > { %v603_v36 = vmul.f32 %v602_v2, %v600_v35 }
 0x1d7   : > { %605 = vst.msk [vmem:[%s256_s19] sm:$0xff] %vm604_vm7, %v603_v36 }
 0x1d8   : > { %v593_v37 = vpop.f32.mrf.mxu1 }
 0x1d9   : > { %802 = shalt.err (!%p799_p3)
}
 0x1da   : > { %729 = dma.vmem_to_hbm [thread:$0]  (%p916_p5), %s620_s20, 128, %s622_s21, %s607_s5  }
 0x1db PF: > { %p735_p4 = scmp.ge.s32.totalorder %s837_s26, 2  ;;  %s633_s10 = sand.u32 1, %s825_s23  }
 0x1dc   : > { %s634_s14 = scalar_lea.sflag [#allocation4], %s633_s10 }
 0x1dd   : > { %p732_p7 = pnand %p735_p4, %p920_p6 }
 0x1df   : > { %p733_p8 = pneg %p732_p7 }
 0x1e1   : > { %820 = dma.done.wait (%p733_p8), %s634_s14, 128  }
 0x1e2   : > { %822 = vsyncadd (%p733_p8), %s634_s14, 4294967168  ;;  %p17_p9 = scmp.ge.s32.totalorder %s903_s28, 4   ;;  %s1028_s23 = smov %s829_s24 }
 0x1e3   : > { %s1029_s24 = smov %s833_s25  ;;  %s1030_s25 = smov %s914_s7 }
 0x1e4   : > { %s1031_s26 = smov %s903_s28  ;;  %19 = sbr.rel (!%p17_p9) target bundleno = 5 (0x5), region = 82 }
 0x1e9   :  { %640 = vsyncpa [#allocation4], 1 }
 0x1ea   :  { %642 = vsyncpa [#allocation4 + $0x1], 1 }

</bundles_post_ra>
